<compile_context>
chip_gen: v5e
topology: v5e:2x2
jax: 0.10.0
libtpu: 0.0.40
codegen_flags: <defaults>
</compile_context>

<pallas_src>
import math

import numpy as np
import jax
import jax.numpy as jnp
from jax.experimental import pallas as pl
from jax.experimental.pallas import tpu as pltpu


def _make_pe(max_len: int, d_model: int) -> jnp.ndarray:
    """Sinusoidal positional-encoding table, exactly as the PyTorch __init__.
    Shape [1, max_len, d_model], float32."""
    position = np.arange(0, max_len, dtype=np.float32)[:, None]               # [max_len, 1]
    div_term = np.exp(np.arange(0, d_model, 2, dtype=np.float32)
                      * (-np.log(10000.0) / d_model))                          # [ceil(d/2)]
    pe = np.zeros((max_len, d_model), dtype=np.float32)
    pe[:, 0::2] = np.sin(position * div_term)
    pe[:, 1::2] = np.cos(position * div_term[: d_model // 2])                  # odd d_model safe
    return jnp.asarray(pe[None, :, :])                                         # [1, max_len, d_model]


def _pos_enc_kernel(x_ref, pe_ref, o_ref):
    # x/out tiles: (TB, TS, D2); pe tile: (1, TS, D2) -> VPU add broadcasts over
    # the leading (batch-fold) dim; explicit dtype cast on store.
    o_ref[...] = (x_ref[...] + pe_ref[...]).astype(o_ref.dtype)


def _sublane_multiple(dtype) -> int:
    """Native sublane packing multiple: 8 for 4-byte, 16 for 2-byte, 32 for 1-byte."""
    return max(8, 32 // jnp.dtype(dtype).itemsize)


def _default_target_bytes() -> int:
    """Per-block byte target sized to each generation's scoped-VMEM budget:
    ~4 MiB on v4/v5p/v6e/v7x (32 MiB scoped default), ~2 MiB on v5e/older."""
    try:
        kind = jax.devices()[0].device_kind.lower()
    except Exception:
        return 2 << 20
    if any(tag in kind for tag in ("v4", "v5p", "v6", "v7")):
        return 4 << 20
    return 2 << 20


def _choose_seq_tile(s2: int, d2: int, itemsize: int, sub: int, target_bytes: int) -> int:
    """Largest seq-tile TS that is either the full axis, or a divisor of s2 that is
    a multiple of `sub` (dtype-native sublane packing), with one (TS, d2) block
    around target_bytes."""
    max_ts = max(1, target_bytes // (d2 * itemsize))
    if s2 <= max_ts:
        return s2
    start = (min(s2, max_ts) // sub) * sub
    for ts in range(start, sub - 1, -sub):
        if s2 % ts == 0:
            return ts
    return s2  # no aligned divisor: single full-axis block (still correct)


def _choose_tiles(B: int, s2: int, d2: int, itemsize: int, sub: int, target_bytes: int):
    """Pick (TS, TB): seq tile first, then fold as much of the batch as fits the
    per-block byte target.  Keep >=2 grid steps when there is enough data for the
    split to matter (feeds both v7x TensorCores on 'parallel' axes)."""
    TS = _choose_seq_tile(s2, d2, itemsize, sub, target_bytes)
    row_bytes = d2 * itemsize
    blk_bytes = TS * row_bytes
    TB = 1
    for cand in range(B, 0, -1):
        if B % cand == 0 and cand * blk_bytes <= max(target_bytes, blk_bytes):
            TB = cand
            break
    if (s2 // TS) * (B // TB) == 1 and B > 1 and B * s2 * row_bytes >= (1 << 20):
        for cand in range(B // 2, 0, -1):
            if B % cand == 0:
                TB = cand
                break
    return TS, TB


def positional_encoding_forward(x: jnp.ndarray, pe_full: jnp.ndarray, *,
                                donate_x: bool = False,
                                cast_pe_to_x_dtype: bool = True,
                                target_block_bytes: int | None = None) -> jnp.ndarray:
    """x: [B, S, D]; pe_full: [1, max_len, D] float32. Returns x + pe[:, :S]."""
    B, S, D = x.shape
    _, max_len, D_pe = pe_full.shape
    assert D == D_pe and S <= max_len

    dtype = x.dtype
    itemsize = jnp.dtype(dtype).itemsize
    sub = _sublane_multiple(dtype)
    if target_block_bytes is None:
        target_block_bytes = _default_target_bytes()

    # Lane-dense repack: smallest r such that (r * D) % 128 == 0.  Pad S up to a
    # multiple of r (zero rows, sliced off the output) instead of falling back to
    # lane-masked partial stores.
    r = 128 // math.gcd(D, 128)
    S_pad = -(-S // r) * r
    pad = S_pad - S
    if pad:
        x = jnp.pad(x, ((0, 0), (0, pad), (0, 0)))
    S2, D2 = S_pad // r, D * r                      # D2 is always a multiple of 128
    x2 = x.reshape(B, S2, D2)                       # contiguous -> free reshape

    TS, TB = _choose_tiles(B, S2, D2, itemsize, sub, target_block_bytes)
    num_t, num_b = S2 // TS, B // TB

    # PE operand: index the full table directly via the BlockSpec (no HBM copy)
    # whenever layout/alignment allows; otherwise materialize a small [S, D] slice
    # (cast to x.dtype so bf16 activations don't stream an f32 table).
    cast_pe = cast_pe_to_x_dtype and pe_full.dtype != dtype
    pe_direct_ok = (not cast_pe and pad == 0 and max_len % r == 0
                    and (TS % sub == 0 or S2 == max_len // r))
    if pe_direct_ok:
        pe2 = pe_full.reshape(1, max_len // r, D2)
    else:
        pe_slice = pe_full[:, :S, :]
        if cast_pe:
            pe_slice = pe_slice.astype(dtype)
        if pad:
            pe_slice = jnp.pad(pe_slice, ((0, 0), (0, pad), (0, 0)))
        pe2 = pe_slice.reshape(1, S2, D2)

    # Explicit VMEM budget: x + out double-buffered, pe double-buffered, + headroom.
    x_blk_bytes = TB * TS * D2 * itemsize
    pe_blk_bytes = TS * D2 * jnp.dtype(pe2.dtype).itemsize
    needed = 4 * x_blk_bytes + 2 * pe_blk_bytes
    vmem_limit = int(min(max(needed + (4 << 20), 16 << 20), 48 << 20))

    out2 = pl.pallas_call(
        _pos_enc_kernel,
        out_shape=jax.ShapeDtypeStruct((B, S2, D2), dtype),
        grid_spec=pltpu.PrefetchScalarGridSpec(
            num_scalar_prefetch=0,
            # Seq-tiles outer, batch-blocks inner: the pe block index only changes
            # on the outer axis, so the pe tile stays resident across the batch loop.
            grid=(num_t, num_b),
            in_specs=[
                pl.BlockSpec((TB, TS, D2), lambda t, b: (b, t, 0)),   # x tile
                pl.BlockSpec((1, TS, D2), lambda t, b: (0, t, 0)),    # pe (batch-broadcast)
            ],
            out_specs=pl.BlockSpec((TB, TS, D2), lambda t, b: (b, t, 0)),
        ),
        compiler_params=pltpu.CompilerParams(
            dimension_semantics=("parallel", "parallel"),
            vmem_limit_bytes=vmem_limit,
        ),
        input_output_aliases=({0: 0} if donate_x else {}),
    )(x2, pe2)

    out = out2.reshape(B, S_pad, D)
    if pad:
        out = out[:, :S, :]
    return out


if __name__ == "__main__":
    k0, k1, k2 = jax.random.split(jax.random.PRNGKey(0), 3)

    # Config 1: d_model < 128 -> lane-dense repack (r=4), batch folded into block.
    batch, seq_len, d_model, max_len = 2, 8, 32, 64
    x = jax.random.normal(k0, (batch, seq_len, d_model), dtype=jnp.float32)
    pe_full = _make_pe(max_len, d_model)
    out = jax.block_until_ready(positional_encoding_forward(x, pe_full))
    ref = x + pe_full[:, :seq_len, :]
    np.testing.assert_allclose(np.asarray(out), np.asarray(ref), rtol=1e-6, atol=1e-6)

    # Config 2: d_model already a multiple of 128 -> natural layout, PE table
    # indexed directly through its BlockSpec (no slice / HBM copy).
    b2, s2, dm2, ml2 = 2, 16, 128, 64
    x_b = jax.random.normal(k1, (b2, s2, dm2), dtype=jnp.float32)
    pe_b = _make_pe(ml2, dm2)
    out_b = jax.block_until_ready(positional_encoding_forward(x_b, pe_b))
    ref_b = x_b + pe_b[:, :s2, :]
    np.testing.assert_allclose(np.asarray(out_b), np.asarray(ref_b), rtol=1e-6, atol=1e-6)

    # Config 3: bf16 input with seq_len NOT a multiple of the repack factor ->
    # padding path + dtype-aware sublane alignment + PE cast to x.dtype.
    b3, s3, dm3, ml3 = 2, 10, 32, 64
    x_c = jax.random.normal(k2, (b3, s3, dm3), dtype=jnp.float32).astype(jnp.bfloat16)
    pe_c = _make_pe(ml3, dm3)
    out_c = jax.block_until_ready(positional_encoding_forward(x_c, pe_c))
    ref_c = x_c + pe_c[:, :s3, :].astype(jnp.bfloat16)
    np.testing.assert_allclose(np.asarray(out_c.astype(jnp.float32)),
                               np.asarray(ref_c.astype(jnp.float32)),
                               rtol=2e-2, atol=2e-2)

    print("KERNEL_OK")
</pallas_src>

<mosaic_0001>
module attributes {stable_mosaic.version = 11 : i64} {
  func.func @_pos_enc_kernel(%arg0: i32, %arg1: i32, %arg2: memref<2x2x128xf32, #tpu.memory_space<vmem>>, %arg3: memref<1x2x128xf32, #tpu.memory_space<vmem>>, %arg4: memref<2x2x128xf32, #tpu.memory_space<vmem>>) attributes {dimension_semantics = [#tpu.dimension_semantics<parallel>, #tpu.dimension_semantics<parallel>], iteration_bounds = array<i64: 1, 1>, scalar_prefetch = 0 : i64, scratch_operands = 0 : i64, tpu.core_type = #tpu.core_type<tc>, window_params = [{transform_indices = @transform_0, window_bounds = array<i64: 2, 2, 128>}, {transform_indices = @transform_1, window_bounds = array<i64: 1, 2, 128>}, {transform_indices = @transform_2, window_bounds = array<i64: 2, 2, 128>}]} {
    %c0 = arith.constant 0 : index
    %c0_0 = arith.constant 0 : index
    %c0_1 = arith.constant 0 : index
    %0 = vector.load %arg2[%c0, %c0_0, %c0_1] : memref<2x2x128xf32, #tpu.memory_space<vmem>>, vector<2x2x128xf32>
    %c0_2 = arith.constant 0 : index
    %c0_3 = arith.constant 0 : index
    %c0_4 = arith.constant 0 : index
    %1 = vector.load %arg3[%c0_2, %c0_3, %c0_4] : memref<1x2x128xf32, #tpu.memory_space<vmem>>, vector<1x2x128xf32>
    %2 = vector.broadcast %1 : vector<1x2x128xf32> to vector<2x2x128xf32>
    %3 = arith.addf %0, %2 : vector<2x2x128xf32>
    %c0_5 = arith.constant 0 : index
    %c0_6 = arith.constant 0 : index
    %c0_7 = arith.constant 0 : index
    %4 = vector.load %arg4[%c0_5, %c0_6, %c0_7] : memref<2x2x128xf32, #tpu.memory_space<vmem>>, vector<2x2x128xf32>
    tpu.vector_store %arg4[%c0_5, %c0_6, %c0_7], %3 {strides = array<i32>} : memref<2x2x128xf32, #tpu.memory_space<vmem>>, vector<2x2x128xf32>,
    return
  }
  func.func @transform_0(%arg0: i32, %arg1: i32) -> (i32, i32, i32) {
    %c0_i32 = arith.constant 0 : i32
    %c0_i32_0 = arith.constant 0 : i32
    return %arg1, %arg0, %c0_i32 : i32, i32, i32
  }
  func.func @transform_1(%arg0: i32, %arg1: i32) -> (i32, i32, i32) {
    %c0_i32 = arith.constant 0 : i32
    %c0_i32_0 = arith.constant 0 : i32
    %c0_i32_1 = arith.constant 0 : i32
    return %c0_i32, %arg0, %c0_i32_0 : i32, i32, i32
  }
  func.func @transform_2(%arg0: i32, %arg1: i32) -> (i32, i32, i32) {
    %c0_i32 = arith.constant 0 : i32
    %c0_i32_0 = arith.constant 0 : i32
    return %arg1, %arg0, %c0_i32 : i32, i32, i32
  }
}

</mosaic_0001>

<bundles_post_ra>
// kernel: tpu_custom_call.1
= control target key start
LH: loop header
LB: loop body
LE: loop exit
PB: predicated region body
PF: predicated region fallthrough
CT: control target
= control target key end

     0   :  { %7 = vsyncpa [#allocation3], 0  ;;  %s181_s0 = inlined_call_operand.hbm [shape: f32[2,2,128], index: 0, kind: input, shape index: {}]   ;;  %s182_s1 = inlined_call_operand.hbm [shape: f32[1,2,128], index: 1, kind: input, shape index: {}]   ;;  %s183_s2 = inlined_call_operand.hbm [shape: f32[2,2,128], index: 2, kind: output, shape index: {}]  }
   0x1   :  { %8 = vsyncpa [#allocation6], 0 }
   0x2   :  { %9 = vsyncpa [#allocation4], 0  ;;  %s14_s11 = sshll.u32 %s181_s0, 4  ;;  %s152_s12 = smov [#allocation2]   ;;  %s15_s11 = int_to_ptr.hbm [resolvable:$true] %s14_s11 }
   0x3   :  { %s16_s13 = sshll.u32 %s152_s12, 4  ;;  %s28_s16 = sshll.u32 %s182_s1, 4  ;;  %s17_s13 = int_to_ptr.vmem [resolvable:$true] %s16_s13  ;;  %s29_s16 = int_to_ptr.hbm [resolvable:$true] %s28_s16 }
   0x4   :  { %s153_s17 = smov 32   ;;  %s154_s18 = smov 2  }
   0x5   :  { %22 = dma.hbm_to_vmem [thread:$0]  %s15_s11, 64, %s17_s13, [#allocation3], %s153_s17, %s153_s17, %s154_s18  }
   0x6   :  { %s155_s19 = smov [#allocation5]  }
   0x7   :  { %s30_s20 = sshll.u32 %s155_s19, 4  ;;  %s31_s20 = int_to_ptr.vmem [resolvable:$true] %s30_s20 }
   0x8   :  { %33 = dma.hbm_to_vmem [thread:$0]  %s29_s16, 32, %s31_s20, [#allocation6]  }
   0x9   :  { %146 = dma.done.wait [#allocation3], 64  }
   0xa   :  { %147 = vsyncadd [#allocation3], 4294967232 }
   0xb   :  { %148 = dma.done.wait [#allocation6], 32  }
   0xc   :  { %149 = vsyncadd [#allocation6], 4294967264  ;;  %s156_s0 = smov [#allocation7]   ;;  %s55_s24 = sshll.u32 %s183_s2, 4  ;;  %v42_v0 = vld [vmem:[#allocation2] sm:$0x3]  ;;  %s56_s24 = int_to_ptr.hbm [resolvable:$true] %s55_s24 }
   0xd   :  { %s53_s21 = sshll.u32 %s156_s0, 4  ;;  %v44_v1 = vld [vmem:[#allocation5] sm:$0x3]  ;;  %v43_v2 = vld [vmem:[#allocation2 + $0x2] sm:$0x3]  ;;  %s54_s21 = int_to_ptr.vmem [resolvable:$true] %s53_s21 }
   0xe   :  { %v45_v3 = vadd.f32 %v44_v1, %v42_v0  ;;  %v46_v4 = vadd.f32 %v44_v1, %v43_v2 }
  0x10   :  { %47 = vst [vmem:[#allocation7] sm:$0x3] %v45_v3 }
  0x11   :  { %48 = vst [vmem:[#allocation7 + $0x2] sm:$0x3] %v46_v4 }
  0x12   :  { %61 = dma.vmem_to_hbm [thread:$0]  %s54_s21, 64, %s56_s24, [#allocation4], %s153_s17, %s153_s17, %s154_s18  }
  0x13   :  { %150 = dma.done.wait [#allocation4], 64  }
  0x14   :  { %151 = vsyncadd [#allocation4], 4294967232 }
  0x15   :  { %66 = vsyncpa [#allocation3], 1 }
  0x16   :  { %67 = vsyncpa [#allocation6], 1 }
  0x17   :  { %68 = vsyncpa [#allocation4], 1 }

</bundles_post_ra>
